<compile_context>
chip_gen: v7x
topology: tpu7x:2x2x1
jax: 0.10.0
libtpu: 0.0.40
codegen_flags: <defaults>
</compile_context>

<pallas_src>
import jax
import jax.numpy as jnp
from jax import lax
from jax.experimental import pallas as pl
from jax.experimental.pallas import tpu as pltpu

BN_EPS = 1e-5


def _round_up(x, m):
    return (x + m - 1) // m * m


def _stats_kernel(x_ref, gram_ref, xsum_ref):
    # x_ref:    (1, Cin_p, TL)   current (batch, L-tile) slab of the input
    # gram_ref: (Cin_p, Cin_p)   accumulator: sum over all N,L of x x^T
    # xsum_ref: (Cin_p, 1)       accumulator: sum over all N,L of x
    @pl.when(jnp.logical_and(pl.program_id(0) == 0, pl.program_id(1) == 0))
    def _init():
        gram_ref[...] = jnp.zeros_like(gram_ref)
        xsum_ref[...] = jnp.zeros_like(xsum_ref)

    x = x_ref[0].astype(jnp.float32)                       # (Cin_p, TL)
    # G += x @ x^T  (contract over the lane/L axis)  -> MXU
    gram_ref[...] += lax.dot_general(
        x, x, (((1,), (1,)), ((), ())), preferred_element_type=jnp.float32)
    # s += sum over L                                 -> XLU lane reduction
    xsum_ref[...] += jnp.sum(x, axis=1, keepdims=True)


def _apply_kernel(x_ref, w_ref, scale_ref, shift_ref, o_ref):
    # x_ref:     (1, Cin_p, TL)
    # w_ref:     (Cout_p, Cin_p)
    # scale_ref: (Cout_p, 1)   = gamma * rsqrt(var + eps)
    # shift_ref: (Cout_p, 1)   = beta - scale * mean
    # o_ref:     (1, Cout_p, TL)
    x = x_ref[0].astype(jnp.float32)                       # (Cin_p, TL)
    w = w_ref[...].astype(jnp.float32)                     # (Cout_p, Cin_p)
    y = jnp.dot(w, x, preferred_element_type=jnp.float32)  # (Cout_p, TL)  MXU
    y = y * scale_ref[...] + shift_ref[...]                # folded BN affine (one FMA pass)
    o_ref[0] = jnp.maximum(y, 0.0).astype(o_ref.dtype)     # ReLU, lane-dense store


def conv1_forward(x_ncl, conv_w, conv_b, bn_gamma, bn_beta, *, l_tile=512):
    """Forward of PyTorch Conv1(input_channels, output_channels) (training-mode BN).

    x_ncl:   (N, C_in, L)        float32
    conv_w:  (C_out, C_in, 1)    nn.Conv1d weight
    conv_b:  (C_out,)            nn.Conv1d bias (mathematically cancelled by BN; unused)
    bn_gamma/bn_beta: (C_out,)   nn.BatchNorm1d affine params
    returns  (N, C_out, L)       float32
    """
    del conv_b  # exactly cancelled by training-mode BatchNorm mean subtraction
    n, c_in, length = x_ncl.shape
    c_out = conv_w.shape[0]
    m_true = n * length  # true reduction count for BN statistics

    # Pad channels to sublane multiples (8) and L to a lane-tile multiple.
    c_in_p = _round_up(c_in, 8)
    c_out_p = _round_up(c_out, 8)
    tl = min(l_tile, _round_up(length, 128))
    l_p = _round_up(length, tl)
    num_l = l_p // tl

    # Zero padding: padded channels/positions contribute exactly 0 to G and s.
    x_p = jnp.pad(x_ncl, ((0, 0), (0, c_in_p - c_in), (0, l_p - length)))
    w_p = jnp.pad(conv_w[:, :, 0], ((0, c_out_p - c_out), (0, c_in_p - c_in)))
    gamma_p = jnp.pad(bn_gamma, (0, c_out_p - c_out))
    beta_p = jnp.pad(bn_beta, (0, c_out_p - c_out))

    # ---------------- Pass 1: accumulate Gram matrix and channel sums ----------------
    gram, xsum = pl.pallas_call(
        _stats_kernel,
        out_shape=(
            jax.ShapeDtypeStruct((c_in_p, c_in_p), jnp.float32),
            jax.ShapeDtypeStruct((c_in_p, 1), jnp.float32),
        ),
        grid_spec=pltpu.PrefetchScalarGridSpec(
            num_scalar_prefetch=0,
            grid=(n, num_l),
            in_specs=[pl.BlockSpec((1, c_in_p, tl), lambda i, l: (i, 0, l))],
            out_specs=(
                pl.BlockSpec((c_in_p, c_in_p), lambda i, l: (0, 0)),
                pl.BlockSpec((c_in_p, 1), lambda i, l: (0, 0)),
            ),
        ),
        compiler_params=pltpu.CompilerParams(
            dimension_semantics=("arbitrary", "arbitrary"),
            vmem_limit_bytes=32 * 1024 * 1024,
        ),
    )(x_p)

    # ------------- Finalize: per-channel scale/shift (O(Cout*Cin), negligible) -------------
    sum_y = w_p @ xsum                                          # (Cout_p, 1) = sum of W x
    mean = sum_y / m_true
    sum_y2 = jnp.sum((w_p @ gram) * w_p, axis=1, keepdims=True)  # diag(W G W^T)
    var = jnp.maximum(sum_y2 / m_true - mean * mean, 0.0)        # clamp tiny fp cancellation
    inv_std = lax.rsqrt(var + BN_EPS)
    scale = gamma_p[:, None] * inv_std                          # (Cout_p, 1)
    shift = beta_p[:, None] - scale * mean                      # (Cout_p, 1)

    # ---------------- Pass 2: matmul + fused BN affine + ReLU, written in NCL ----------------
    out_p = pl.pallas_call(
        _apply_kernel,
        out_shape=jax.ShapeDtypeStruct((n, c_out_p, l_p), x_ncl.dtype),
        grid_spec=pltpu.PrefetchScalarGridSpec(
            num_scalar_prefetch=0,
            grid=(n, num_l),
            in_specs=[
                pl.BlockSpec((1, c_in_p, tl), lambda i, l: (i, 0, l)),
                pl.BlockSpec((c_out_p, c_in_p), lambda i, l: (0, 0)),
                pl.BlockSpec((c_out_p, 1), lambda i, l: (0, 0)),
                pl.BlockSpec((c_out_p, 1), lambda i, l: (0, 0)),
            ],
            out_specs=pl.BlockSpec((1, c_out_p, tl), lambda i, l: (i, 0, l)),
        ),
        compiler_params=pltpu.CompilerParams(
            dimension_semantics=("parallel", "parallel"),  # megacore sharding on v7x
            vmem_limit_bytes=32 * 1024 * 1024,
        ),
    )(x_p, w_p, scale, shift)

    # Slice off channel / length padding.
    return out_p[:, :c_out, :length]


def _reference(x_ncl, conv_w, conv_b, bn_gamma, bn_beta):
    # pure-JAX reference of conv1d(k=1) + batchnorm(train) + relu, NCL layout
    y = jnp.einsum("ncl,oc->nol", x_ncl, conv_w[:, :, 0]) + conv_b[None, :, None]
    mean = jnp.mean(y, axis=(0, 2), keepdims=True)
    var = jnp.mean((y - mean) ** 2, axis=(0, 2), keepdims=True)
    y_hat = (y - mean) / jnp.sqrt(var + BN_EPS)
    return jnp.maximum(bn_gamma[None, :, None] * y_hat + bn_beta[None, :, None], 0.0)


if __name__ == "__main__":
    key = jax.random.PRNGKey(0)
    k_x, k_w, k_b = jax.random.split(key, 3)

    N, C_IN, C_OUT, L = 2, 4, 8, 16

    x = jax.random.normal(k_x, (N, C_IN, L), dtype=jnp.float32)

    # deterministic parameter init (Conv1d-like uniform fan-in init; BN defaults)
    bound = 1.0 / (C_IN * 1) ** 0.5
    conv_w = jax.random.uniform(k_w, (C_OUT, C_IN, 1), jnp.float32, -bound, bound)
    conv_b = jax.random.uniform(k_b, (C_OUT,), jnp.float32, -bound, bound)
    bn_gamma = jnp.ones((C_OUT,), jnp.float32)
    bn_beta = jnp.zeros((C_OUT,), jnp.float32)

    out = conv1_forward(x, conv_w, conv_b, bn_gamma, bn_beta)
    out = jax.block_until_ready(out)

    ref = _reference(x, conv_w, conv_b, bn_gamma, bn_beta)
    assert out.shape == (N, C_OUT, L)
    assert jnp.allclose(out, ref, atol=1e-4, rtol=1e-4), float(jnp.max(jnp.abs(out - ref)))

    # TODO(synk): optionally cast x/W to bf16 for the matmuls on v6e/v7x when the
    # downstream consumer tolerates bf16 outputs (halves HBM traffic).
    print("KERNEL_OK")
</pallas_src>

<mosaic_0001>
module attributes {stable_mosaic.version = 11 : i64} {
  func.func @_stats_kernel(%arg0: i32, %arg1: i32, %arg2: memref<1x8x128xf32, #tpu.memory_space<vmem>>, %arg3: memref<8x8xf32, #tpu.memory_space<vmem>>, %arg4: memref<8x1xf32, #tpu.memory_space<vmem>>) attributes {dimension_semantics = [#tpu.dimension_semantics<arbitrary>, #tpu.dimension_semantics<arbitrary>], iteration_bounds = array<i64: 2, 1>, scalar_prefetch = 0 : i64, scratch_operands = 0 : i64, tpu.core_type = #tpu.core_type<tc>, window_params = [{transform_indices = @transform_0, window_bounds = array<i64: 1, 8, 128>}, {pipeline_mode = #tpu.pipeline_mode<synchronous>, transform_indices = @transform_1, window_bounds = array<i64: 8, 8>}, {pipeline_mode = #tpu.pipeline_mode<synchronous>, transform_indices = @transform_2, window_bounds = array<i64: 8, 1>}]} {
    %c0_i32 = arith.constant 0 : i32
    %0 = arith.cmpi eq, %arg0, %c0_i32 : i32
    %c0_i32_0 = arith.constant 0 : i32
    %1 = arith.cmpi eq, %arg1, %c0_i32_0 : i32
    %2 = arith.andi %0, %1 : i1
    %3 = arith.extui %2 : i1 to i32
    %c0_i32_1 = arith.constant 0 : i32
    %4 = arith.cmpi ne, %3, %c0_i32_1 : i32
    scf.if %4 {
      %cst_13 = arith.constant 0.000000e+00 : f32
      %16 = vector.broadcast %cst_13 : f32 to vector<8x8xf32>
      %c0_14 = arith.constant 0 : index
      %c0_15 = arith.constant 0 : index
      %17 = vector.load %arg3[%c0_14, %c0_15] : memref<8x8xf32, #tpu.memory_space<vmem>>, vector<8x8xf32>
      tpu.vector_store %arg3[%c0_14, %c0_15], %16 {strides = array<i32>} : memref<8x8xf32, #tpu.memory_space<vmem>>, vector<8x8xf32>,
      %cst_16 = arith.constant 0.000000e+00 : f32
      %18 = vector.broadcast %cst_16 : f32 to vector<8x1xf32>
      %c0_17 = arith.constant 0 : index
      %c0_18 = arith.constant 0 : index
      %19 = vector.load %arg4[%c0_17, %c0_18] : memref<8x1xf32, #tpu.memory_space<vmem>>, vector<8x1xf32>
      tpu.vector_store %arg4[%c0_17, %c0_18], %18 {strides = array<i32>} : memref<8x1xf32, #tpu.memory_space<vmem>>, vector<8x1xf32>,
    } else {
    }
    %c0 = arith.constant 0 : index
    %c0_2 = arith.constant 0 : index
    %c0_3 = arith.constant 0 : index
    %5 = vector.load %arg2[%c0, %c0_2, %c0_3] : memref<1x8x128xf32, #tpu.memory_space<vmem>>, vector<1x8x128xf32>
    %6 = vector.shape_cast %5 : vector<1x8x128xf32> to vector<8x128xf32>
    %c0_4 = arith.constant 0 : index
    %c0_5 = arith.constant 0 : index
    %7 = vector.load %arg3[%c0_4, %c0_5] : memref<8x8xf32, #tpu.memory_space<vmem>>, vector<8x8xf32>
    %cst = arith.constant dense<0.000000e+00> : vector<8x8xf32>
    %8 = tpu.matmul %6, %6, %cst {dimension_numbers = #tpu.dot_dimension_numbers<[1], [1], [0], [0], [0, 0, 1, 0], [], []>} : vector<8x128xf32>, vector<8x128xf32>, vector<8x8xf32> -> vector<8x8xf32>
    %9 = arith.addf %7, %8 : vector<8x8xf32>
    %c0_6 = arith.constant 0 : index
    %c0_7 = arith.constant 0 : index
    %10 = vector.load %arg3[%c0_6, %c0_7] : memref<8x8xf32, #tpu.memory_space<vmem>>, vector<8x8xf32>
    tpu.vector_store %arg3[%c0_6, %c0_7], %9 {strides = array<i32>} : memref<8x8xf32, #tpu.memory_space<vmem>>, vector<8x8xf32>,
    %c0_8 = arith.constant 0 : index
    %c0_9 = arith.constant 0 : index
    %11 = vector.load %arg4[%c0_8, %c0_9] : memref<8x1xf32, #tpu.memory_space<vmem>>, vector<8x1xf32>
    %cst_10 = arith.constant dense<0.000000e+00> : vector<8xf32>
    %12 = vector.multi_reduction <add>, %6, %cst_10 [1] : vector<8x128xf32> to vector<8xf32>
    %13 = vector.shape_cast %12 : vector<8xf32> to vector<8x1xf32>
    %14 = arith.addf %11, %13 : vector<8x1xf32>
    %c0_11 = arith.constant 0 : index
    %c0_12 = arith.constant 0 : index
    %15 = vector.load %arg4[%c0_11, %c0_12] : memref<8x1xf32, #tpu.memory_space<vmem>>, vector<8x1xf32>
    tpu.vector_store %arg4[%c0_11, %c0_12], %14 {strides = array<i32>} : memref<8x1xf32, #tpu.memory_space<vmem>>, vector<8x1xf32>,
    return
  }
  func.func @transform_0(%arg0: i32, %arg1: i32) -> (i32, i32, i32) {
    %c0_i32 = arith.constant 0 : i32
    %c0_i32_0 = arith.constant 0 : i32
    return %arg0, %c0_i32, %arg1 : i32, i32, i32
  }
  func.func @transform_1(%arg0: i32, %arg1: i32) -> (i32, i32) {
    %c0_i32 = arith.constant 0 : i32
    %c0_i32_0 = arith.constant 0 : i32
    %c0_i32_1 = arith.constant 0 : i32
    return %c0_i32, %c0_i32_0 : i32, i32
  }
  func.func @transform_2(%arg0: i32, %arg1: i32) -> (i32, i32) {
    %c0_i32 = arith.constant 0 : i32
    %c0_i32_0 = arith.constant 0 : i32
    %c0_i32_1 = arith.constant 0 : i32
    return %c0_i32, %c0_i32_0 : i32, i32
  }
}

</mosaic_0001>

<bundles_post_ra>
// kernel: tpu_custom_call.1
= control target key start
LH: loop header
LB: loop body
LE: loop exit
PB: predicated region body
PF: predicated region fallthrough
CT: control target
= control target key end

     0   :  { %8 = vsyncpa [#allocation3], 0  ;;  %s701_s0 = inlined_call_operand.hbm [shape: f32[2,8,128], index: 0, kind: input, shape index: {}]   ;;  %s702_s1 = inlined_call_operand.hbm [shape: f32[8,8], index: 1, kind: output, shape index: {0}]   ;;  %s703_s2 = inlined_call_operand.vmem [shape: f32[8,1], index: 2, kind: output, shape index: {1}]  }
   0x1   :  { %10 = vsyncpa [#allocation3 + $0x1], 0 }
   0x2   :  { %11 = vsyncpa [#allocation4], 0  ;;  %s541_s9 = smov 0   ;;  %s543_s10 = smov 0  }
   0x3   :  { %s545_s11 = smov 0   ;;  %s547_s12 = smov 0  }
   0x4   :  { %s549_s13 = smov 0   ;;  %s551_s14 = smov 0  }
   0x5 LB: > { %s324_s15 = sadd.s32 4294967295, %s519_s14   ;;  %s29_s16 = sadd.s32 1, %s515_s13  ;;  %s519_s14 = sphi %s551_s14, %s17_s14   ;;  %s515_s13 = sphi %s549_s13, %s714_s13   ;;  %s511_s12 = sphi %s547_s12, %s713_s12   ;;  %s507_s11 = sphi %s545_s11, %s712_s11   ;;  %s503_s10 = sphi %s543_s10, %s711_s10   ;;  %s499_s9 = sphi %s541_s9, %s710_s9  }
   0x6   : > { %p31_p0 = scmp.ge.s32.totalorder %s29_s16, 2  ;;  %s38_s17 = sadd.s32 1, %s507_s11 }
   0x7   : > { %p45_p1 = scmp.ne.s32.totalorder %s507_s11, %s503_s10  ;;  %p46_p2 = scmp.eq.s32.totalorder %s519_s14, 0 }
   0x8   : > { %s716_s16 = smov (%p31_p0, %s29_s16), 0  ;;  %p51_p4 = scmp.ne.s32.totalorder %s503_s10, %s499_s9 }
   0x9   : > { %p577_p3 = por %p46_p2, %p45_p1  ;;  %s33_s19 = ssub.s32 %s515_s13, %s716_s16 }
   0xa   : > { %p52_p5 = scmp.eq.s32.totalorder %s324_s15, 0  ;;  %p36_p6 = scmp.eq.s32.totalorder %s33_s19, 0 }
   0xb   : > { %p354_p8 = scmp.lt.s32.totalorder %s519_s14, 2  ;;  %s117_s22 = sand.u32 1, %s507_s11  }
   0xc   : > { %p586_p7 = por %p52_p5, %p51_p4  ;;  %s328_s23 = sshll.u32 %s515_s13, 7 }
   0xd   : > { %s592_s21 = scalar_select %p36_p6, %s507_s11, %s38_s17  }
   0xe   : > { %s327_s24 = sshll.u32 %s117_s22, 3  ;;  %s599_s27 = scalar_lea.hbm %s701_s0, %s328_s23 }
   0xf   : > { %s121_s28 = scalar_lea.vmem [#allocation2], %s327_s24  ;;  %p603_p9 = pnand %p354_p8, %p577_p3 }
  0x10   : > { %s129_s29 = sshll.u32 %s121_s28, 4  ;;  %s118_s3 = scalar_lea.sflag [#allocation3], %s117_s22  ;;  %s607_s29 = int_to_ptr.vmem [resolvable:$true] %s129_s29 }
  0x11   : > { %s409_s4 = scalar_lea.hbm %s599_s27, 128  ;;  %p411_p13 = pneg %p603_p9 }
  0x12   : > { %p410_p12 = scmp.ne.s32.totalorder %s599_s27, %s409_s4  ;;  %s414_s7 = scalar_lea.hbm %s701_s0, 256 }
  0x13   : > { %p415_p2 = scmp.lt.u32.totalorder %s599_s27, %s701_s0  ;;  %p416_p3 = scmp.lt.u32.totalorder %s414_s7, %s409_s4 }
  0x14   : > { %p412_p0 = pnand %p411_p13, %p410_p12  ;;  %p418_p5 = scmp.lt.u32.totalorder %s409_s4, %s599_s27 }
  0x15   : > { %p417_p4 = por %p416_p3, %p415_p2 }
  0x16   : > { %p413_p1 = pneg %p412_p0 }
  0x17   : > { %p419_p6 = por %p418_p5, %p417_p4 }
  0x19   : > { %p420_p8 = pnand %p419_p6, %p413_p1 }
  0x1b   : > { %423 = shalt.err (!%p420_p8)
}
  0x1c   : > { %s424_s17 = scalar_lea.vmem %s607_s29, 128  ;;  %s521_s18 = smov [#allocation2]  }
  0x1d   : > { %p425_p12 = scmp.ne.s32.totalorder %s607_s29, %s424_s17  ;;  %s429_s19 = sshll.u32 %s521_s18, 4  ;;  %s430_s19 = int_to_ptr.vmem [resolvable:$false] %s429_s19 }
  0x1e   : > { %s431_s22 = scalar_lea.vmem %s430_s19, 256  ;;  %p432_p11 = scmp.lt.s32.totalorder %s607_s29, %s430_s19 }
  0x1f   : > { %p427_p0 = pnand %p425_p12, %p411_p13  ;;  %p433_p2 = scmp.lt.s32.totalorder %s431_s22, %s424_s17 }
  0x21   : > { %p428_p10 = pneg %p427_p0  ;;  %p434_p3 = por %p433_p2, %p432_p11 }
  0x23   : > { %p435_p4 = pnand %p434_p3, %p428_p10 }
  0x25   : > { %438 = shalt.err (!%p435_p4)
}
  0x26   : > { %353 = dma.hbm_to_vmem [thread:$0]  (!%p603_p9), %s599_s27, 128, %s607_s29, %s118_s3  }
  0x27   : > { %p707_p1 = scmp.lt.s32.totalorder %s519_s14, 3  ;;  %p708_p5 = scmp.ge.s32.totalorder %s519_s14, 1 }
  0x29   : > { %p135_p13 = pnand %p708_p5, %p707_p1 }
  0x2a   : > { %s140_s23 = sand.u32 (!%p135_p13), 1, %s503_s10  }
  0x2b   : > { %138 = sbr.rel (%p135_p13) target bundleno = 294 (0x126), region = 24  ;;  %s330_s24 = sshll.u32 (!%p135_p13), %s140_s23, 3 }
  0x2c   : > { %s141_s25 = scalar_lea.sflag (!%p135_p13), [#allocation3], %s140_s23  ;;  %s144_s26 = scalar_lea.vmem (!%p135_p13), [#allocation2], %s330_s24 }
  0x32   : > { %490 = dma.done.wait (%p586_p7), %s141_s25, 128  }
  0x33   : > { %492 = vsyncadd (%p586_p7), %s141_s25, 4294967168  ;;  %p160_p10 = scmp.eq.s32.totalorder %s511_s12, 0 }
  0x34   : > { %vm166_vm0 = vcmask (%p160_p10), 64512   ;;  %vm168_vm1 = vcmask (%p160_p10), 7168   ;;  %v522_v0 = vmov (%p160_p10), 0.0  }
  0x35   : > { %165 = sbr.rel (!%p160_p10) target bundleno = 60 (0x3c), region = 32  ;;  %167 = vst.msk [vmem:[#allocation5] sm:$0xff] (%p160_p10), %vm166_vm0, %v522_v0 }
  0x36   : > { %169 = vst.msk [vmem:[%s703_s2] sm:$0xff] (%p160_p10), %vm168_vm1, %v522_v0 }
  0x3c PF: > { %v170_v1 = vld [vmem:[%s144_s26] sm:$0xff]  ;;  %v523_v2 = vmov 0.0   ;;  %vm524_vm2 = vmmov 0   ;;  %vm249_vm3 = vcmask 7168   ;;  %v171_v6 = vld [vmem:[#allocation5] sm:$0xff]  ;;  %s525_s3 = smov [#allocation5]  }
  0x3d   : > { %339 = vmatprep.subr.mxu0 %v523_v2  ;;  %341 = vmatprep.mubr.msk.f32.mxu0 %vm524_vm2, %v523_v2  ;;  %v245_v3 = vld [vmem:[%s703_s2] sm:$0xff]  ;;  %s258_s4 = sshll.u32 %s525_s3, 4  ;;  %vm243_vm4 = vcmask 64512   ;;  %p657_p7 = scmp.eq.s32.totalorder %s324_s15, 1  ;;  %s259_s4 = int_to_ptr.vmem [resolvable:$true] %s258_s4 }
  0x3e   : > { %340 = vmatpush3.xpose.msra.mxu0 %v170_v1  ;;  %246 = vadd.xlane.f32.xlu0 %v170_v1  ;;  %s439_s6 = scalar_lea.vmem %s259_s4, 128  ;;  %p446_p8 = scmp.lt.s32.totalorder %s259_s4, %s259_s4 }
  0x3f   : > { %p440_p9 = scmp.ne.s32.totalorder %s259_s4, %s439_s6  ;;  %p447_p12 = scmp.lt.s32.totalorder %s439_s6, %s439_s6 }
  0x41   : > { %342 = vmatmul.mubr.f32.vlgmr.msra.gmra.mrb[0].mxu0 %v170_v1  ;;  %p441_p11 = pnand %p440_p9, %p657_p7  ;;  %p448_p0 = por %p447_p12, %p446_p8 }
  0x43   : > { %p442_p6 = pneg %p441_p11 }
  0x45   : > { %p449_p2 = pnand %p448_p0, %p442_p6 }
  0xcb   : > { %v247_v4 = vpop.xlane.xlu0 %246 }
  0xcc   : > { %v248_v5 = vadd.f32 %v247_v4, %v245_v3 }
  0xce   : > { %250 = vst.msk [vmem:[%s703_s2] sm:$0xff] %vm249_vm3, %v248_v5 }
 0x114   : > { %v238_v7 = vpop.f32.mrb[0].mxu0 }
 0x115   : > { %v242_v8 = vadd.f32 %v238_v7, %v171_v6  ;;  %v343_v9 = vpop.f32.mrb[1].mxu0 }
 0x117   : > { %244 = vst.msk [vmem:[#allocation5] sm:$0xff] %vm243_vm4, %v242_v8 }
 0x118   : > { %452 = shalt.err (!%p449_p2)
}
 0x119   : > { %s453_s8 = scalar_lea.hbm %s702_s1, 128 }
 0x11a   : > { %p454_p3 = scmp.ne.s32.totalorder %s702_s1, %s453_s8  ;;  %p459_p5 = scmp.lt.u32.totalorder %s453_s8, %s702_s1 }
 0x11c   : > { %p455_p4 = pnand %p454_p3, %p657_p7 }
 0x11e   : > { %p456_p1 = pneg %p455_p4 }
 0x120   : > { %p461_p13 = pnand %p459_p5, %p456_p1 }
 0x122   : > { %464 = shalt.err (!%p461_p13)
}
 0x123   : > { %347 = dma.vmem_to_hbm [thread:$0]  (%p657_p7), %s259_s4, 128, %s702_s1, [#allocation4]  }
 0x124   : > { %494 = dma.done.wait (%p657_p7), [#allocation4], 128  }
 0x125   : > { %496 = vsyncadd (%p657_p7), [#allocation4], 4294967168 }
 0x126 PF: > { %s17_s14 = sadd.s32 1, %s519_s14   ;;  %s710_s9 = smov %s503_s10 }
 0x127   : > { %p14_p10 = scmp.ge.s32.totalorder %s17_s14, 4   ;;  %s711_s10 = smov %s507_s11 }
 0x128   : > { %s712_s11 = smov %s592_s21  ;;  %s713_s12 = smov %s515_s13 }
 0x129   : > { %s714_s13 = smov %s716_s16  ;;  %16 = sbr.rel (!%p14_p10) target bundleno = 5 (0x5), region = 73 }
 0x130   :  { %277 = vsyncpa [#allocation3], 1 }
 0x131   :  { %279 = vsyncpa [#allocation3 + $0x1], 1 }
 0x132   :  { %280 = vsyncpa [#allocation4], 1 }
 0x133   :  { %282 = vsyncpa [#allocation4 + $0x1], 1 }

</bundles_post_ra>
